<compile_context>
chip_gen: v5e
topology: v5e:2x2
jax: 0.10.0
libtpu: 0.0.40
codegen_flags: <defaults>
</compile_context>

<pallas_src>
import functools
import math

import numpy as np

import jax
import jax.numpy as jnp
from jax.experimental import pallas as pl
from jax.experimental.pallas import tpu as pltpu


def _vmem_budget_bytes() -> int:
    """Generation-aware scoped-VMEM budget: 75% of the physical per-core VMEM."""
    capacity = 64 * 1024 * 1024  # conservative fallback = v7x per-TensorCore VMEM
    try:
        info = pltpu.get_tpu_info()
        cap = int(getattr(info, "vmem_capacity_bytes", 0) or 0)
        if cap > 0:
            capacity = cap
    except Exception:
        pass
    return (capacity * 3) // 4


def _build_weight_matrix(L, kernel_size, stride, pad_front, pad_end):
    """Constant banded (L_out, L) matrix folding replicate padding + AvgPool1d.

    out[b, t, c] = sum_l W[t, l] * x[b, l, c], with
    W[t, l] = (#taps of window t that hit source index l after clipping) / k.
    """
    L_pad = L + pad_front + pad_end
    L_out = (L_pad - kernel_size) // stride + 1
    src = np.clip(np.arange(L_pad) - pad_front, 0, L - 1)              # (L_pad,)
    t_idx = np.repeat(np.arange(L_out), kernel_size)                   # (L_out*k,)
    j_idx = (np.arange(L_out)[:, None] * stride
             + np.arange(kernel_size)[None, :]).reshape(-1)            # (L_out*k,)
    counts = np.zeros((L_out, L), dtype=np.float64)
    np.add.at(counts, (t_idx, src[j_idx]), 1.0)
    w = (counts / float(kernel_size)).astype(np.float32)
    # TODO(synk): for very long series (L >~ 4k) this dense (L_out, L) matrix gets
    # large; a shifted-partial-sum kernel should be used instead for that regime.
    return w, L_out


def _pick_tiles(B, L, L_out, C, itemsize, budget, n_outputs):
    """Choose (TB, TC) so blocks are ~1-2 MiB, fit the VMEM budget, and the grid
    keeps at least 2 steps (one per v7x TensorCore) whenever the problem allows."""
    w_bytes = L_out * L * 4

    def footprint(tb, tc):
        in_blk = tb * L * tc * itemsize
        out_blk = tb * L_out * tc * itemsize
        if n_outputs == 2:
            out_blk += tb * L * tc * itemsize
        f32_tmp = tb * (L + 2 * L_out) * tc * 4      # f32 promote + matmul result
        # 2x for double-buffered in/out blocks, plus W (conservatively 2x), slack.
        return 2 * w_bytes + 2 * (in_blk + out_blk) + f32_tmp + (2 << 20)

    # --- channel tile: lane-dense (multiple of 128) whenever C allows ---------
    if C % 128 == 0:
        tc = 128
        for cand in range(C, 127, -128):           # largest divisor of C first
            if C % cand == 0 and footprint(1, cand) <= budget \
                    and L * cand * itemsize <= (4 << 20):
                tc = cand
                break
    else:
        # Full channel extent: a block dim equal to the array dim is always legal.
        # TODO(synk): for tiny C (< 128 lanes) a wrapper-side relayout putting time
        # on the lane axis would make stores lane-dense, but it costs extra HBM
        # transpose passes, which dominate for this bandwidth-bound op.
        tc = C
    c_steps = C // tc

    # --- batch tile: grow the block toward ~1-2 MiB, keep >= 2 grid steps -----
    target_block_bytes = 1 << 20
    tb = 1
    for d in range(1, B + 1):
        if B % d != 0:
            continue
        if footprint(d, tc) > budget:
            break
        steps = (B // d) * c_steps
        if steps < 2 and B * c_steps >= 2:
            break                                   # keep one step per TensorCore
        tb = d
        if d * L * tc * itemsize >= target_block_bytes:
            break

    return tb, tc, footprint(tb, tc)


def _make_kernel(TB, return_residual):
    if return_residual:
        def kernel(w_ref, x_ref, mean_ref, res_ref):
            w = w_ref[...]                                       # (L_out, L) f32
            for b in range(TB):                                  # static unroll
                xb = x_ref[b].astype(jnp.float32)                # (L, TC)
                m = jnp.dot(w, xb, preferred_element_type=jnp.float32)
                mean_ref[b] = m.astype(mean_ref.dtype)
                res_ref[b] = (xb - m).astype(res_ref.dtype)
        return kernel

    def kernel(w_ref, x_ref, mean_ref):
        w = w_ref[...]                                           # (L_out, L) f32
        for b in range(TB):                                      # static unroll
            xb = x_ref[b].astype(jnp.float32)                    # (L, TC)
            mean_ref[b] = jnp.dot(
                w, xb, preferred_element_type=jnp.float32).astype(mean_ref.dtype)
    return kernel


@functools.partial(jax.jit,
                   static_argnames=("kernel_size", "stride", "return_residual"))
def moving_avg(x, *, kernel_size: int, stride: int = 1,
               return_residual: bool = False):
    """Pallas equivalent of the PyTorch moving_avg.forward.  x: (B, L, C).

    If return_residual=True (stride must be 1), also returns x - moving_mean
    (the series_decomp residual), fused into the same kernel to save HBM traffic.
    """
    B, L, C = x.shape
    k = int(kernel_size)
    stride = int(stride)

    pad_front = (k - 1) - math.floor((k - 1) // 2)
    pad_end = math.floor((k - 1) // 2)

    w_np, L_out = _build_weight_matrix(L, k, stride, pad_front, pad_end)
    w = jnp.asarray(w_np)

    if return_residual and L_out != L:
        raise ValueError("return_residual requires stride=1 (so L_out == L)")

    itemsize = jnp.dtype(x.dtype).itemsize
    budget = _vmem_budget_bytes()
    n_outputs = 2 if return_residual else 1
    TB, TC, need = _pick_tiles(B, L, L_out, C, itemsize, budget, n_outputs)

    grid = (B // TB, C // TC)
    kernel = _make_kernel(TB, return_residual)

    w_spec = pl.BlockSpec((L_out, L), lambda b, c: (0, 0))        # resident constant
    x_spec = pl.BlockSpec((TB, L, TC), lambda b, c: (b, 0, c))
    mean_spec = pl.BlockSpec((TB, L_out, TC), lambda b, c: (b, 0, c))

    out_shape = [jax.ShapeDtypeStruct((B, L_out, C), x.dtype)]
    out_specs = [mean_spec]
    if return_residual:
        out_shape.append(jax.ShapeDtypeStruct((B, L, C), x.dtype))
        out_specs.append(pl.BlockSpec((TB, L, TC), lambda b, c: (b, 0, c)))

    vmem_limit = int(min(max(need, 32 << 20), budget))

    outs = pl.pallas_call(
        kernel,
        out_shape=out_shape,
        grid_spec=pltpu.PrefetchScalarGridSpec(
            num_scalar_prefetch=0,
            grid=grid,
            in_specs=[w_spec, x_spec],
            out_specs=out_specs,
        ),
        compiler_params=pltpu.CompilerParams(
            dimension_semantics=("parallel", "parallel"),
            vmem_limit_bytes=vmem_limit,
        ),
    )(w, x)

    if return_residual:
        return outs[0], outs[1]
    return outs[0]


def _reference_moving_avg(x, kernel_size, stride):
    """Pure-JAX reference mirroring the PyTorch module (for verification)."""
    pad_front = (kernel_size - 1) - (kernel_size - 1) // 2
    pad_end = (kernel_size - 1) // 2
    front = jnp.repeat(x[:, 0:1, :], pad_front, axis=1)
    end = jnp.repeat(x[:, -1:, :], pad_end, axis=1)
    xp = jnp.concatenate([front, x, end], axis=1)
    L_pad = xp.shape[1]
    L_out = (L_pad - kernel_size) // stride + 1
    windows = jnp.stack(
        [xp[:, t * stride:t * stride + kernel_size, :] for t in range(L_out)],
        axis=1,
    )  # (B, L_out, k, C)
    return jnp.mean(windows, axis=2)


if __name__ == "__main__":
    key = jax.random.PRNGKey(0)

    # (B, L, C, kernel_size, stride)
    configs = [
        (2, 16, 8, 5, 1),       # small sanity case
        (2, 96, 8, 25, 1),      # DLinear-typical kernel size
        (2, 48, 256, 25, 1),    # lane-dense channel-tiled path (TC = 256)
        (2, 32, 8, 4, 2),       # strided pooling path (stride > 1)
    ]

    for (B, L, C, ks, st) in configs:
        key, sub = jax.random.split(key)
        x = jax.random.normal(sub, (B, L, C), dtype=jnp.float32)

        out = jax.block_until_ready(moving_avg(x, kernel_size=ks, stride=st))
        ref = _reference_moving_avg(x, ks, st)
        assert out.shape == ref.shape, (out.shape, ref.shape)
        assert jnp.allclose(out, ref, atol=1e-4, rtol=1e-4), \
            f"mean mismatch vs reference for config {(B, L, C, ks, st)}"

    # Fused mean + residual (series_decomp) path.
    key, sub = jax.random.split(key)
    x = jax.random.normal(sub, (2, 96, 8), dtype=jnp.float32)
    mean, res = moving_avg(x, kernel_size=25, stride=1, return_residual=True)
    mean = jax.block_until_ready(mean)
    res = jax.block_until_ready(res)
    ref_mean = _reference_moving_avg(x, 25, 1)
    assert jnp.allclose(mean, ref_mean, atol=1e-4, rtol=1e-4), "fused mean mismatch"
    assert jnp.allclose(res, x - ref_mean, atol=1e-4, rtol=1e-4), "residual mismatch"

    print("KERNEL_OK")
</pallas_src>

<mosaic_0001>
module attributes {stable_mosaic.version = 11 : i64} {
  func.func @kernel(%arg0: i32, %arg1: i32, %arg2: memref<16x16xf32, #tpu.memory_space<vmem>>, %arg3: memref<1x16x8xf32, #tpu.memory_space<vmem>>, %arg4: memref<1x16x8xf32, #tpu.memory_space<vmem>>) attributes {dimension_semantics = [#tpu.dimension_semantics<parallel>, #tpu.dimension_semantics<parallel>], iteration_bounds = array<i64: 2, 1>, scalar_prefetch = 0 : i64, scratch_operands = 0 : i64, tpu.core_type = #tpu.core_type<tc>, window_params = [{pipeline_mode = #tpu.pipeline_mode<synchronous>, transform_indices = @transform_0, window_bounds = array<i64: 16, 16>}, {transform_indices = @transform_1, window_bounds = array<i64: 1, 16, 8>}, {transform_indices = @transform_2, window_bounds = array<i64: 1, 16, 8>}]} {
    %c0 = arith.constant 0 : index
    %c0_0 = arith.constant 0 : index
    %0 = vector.load %arg2[%c0, %c0_0] : memref<16x16xf32, #tpu.memory_space<vmem>>, vector<16x16xf32>
    %c0_1 = arith.constant 0 : index
    %c0_2 = arith.constant 0 : index
    %c0_3 = arith.constant 0 : index
    %1 = vector.load %arg3[%c0_1, %c0_2, %c0_3] : memref<1x16x8xf32, #tpu.memory_space<vmem>>, vector<1x16x8xf32>
    %2 = vector.shape_cast %1 : vector<1x16x8xf32> to vector<16x8xf32>
    %cst = arith.constant dense<0.000000e+00> : vector<16x8xf32>
    %3 = tpu.matmul %0, %2, %cst {dimension_numbers = #tpu.dot_dimension_numbers<[1], [0], [0], [1], [0, 0, 1, 1], [], []>} : vector<16x16xf32>, vector<16x8xf32>, vector<16x8xf32> -> vector<16x8xf32>
    %c0_4 = arith.constant 0 : index
    %c0_5 = arith.constant 0 : index
    %c0_6 = arith.constant 0 : index
    %4 = vector.load %arg4[%c0_4, %c0_5, %c0_6] : memref<1x16x8xf32, #tpu.memory_space<vmem>>, vector<1x16x8xf32>
    %5 = vector.shape_cast %4 : vector<1x16x8xf32> to vector<16x8xf32>
    %6 = vector.shape_cast %3 : vector<16x8xf32> to vector<1x16x8xf32>
    tpu.vector_store %arg4[%c0_4, %c0_5, %c0_6], %6 {strides = array<i32>} : memref<1x16x8xf32, #tpu.memory_space<vmem>>, vector<1x16x8xf32>,
    return
  }
  func.func @transform_0(%arg0: i32, %arg1: i32) -> (i32, i32) {
    %c0_i32 = arith.constant 0 : i32
    %c0_i32_0 = arith.constant 0 : i32
    %c0_i32_1 = arith.constant 0 : i32
    return %c0_i32, %c0_i32_0 : i32, i32
  }
  func.func @transform_1(%arg0: i32, %arg1: i32) -> (i32, i32, i32) {
    %c0_i32 = arith.constant 0 : i32
    %c0_i32_0 = arith.constant 0 : i32
    return %arg0, %c0_i32, %arg1 : i32, i32, i32
  }
  func.func @transform_2(%arg0: i32, %arg1: i32) -> (i32, i32, i32) {
    %c0_i32 = arith.constant 0 : i32
    %c0_i32_0 = arith.constant 0 : i32
    return %arg0, %c0_i32, %arg1 : i32, i32, i32
  }
}

</mosaic_0001>

<bundles_post_ra>
// kernel: moving_avg.1
= control target key start
LH: loop header
LB: loop body
LE: loop exit
PB: predicated region body
PF: predicated region fallthrough
CT: control target
= control target key end

     0   :  { %s375_s9 = smov 0   ;;  %s377_s10 = smov 0   ;;  %s411_s0 = inlined_call_operand.vmem [shape: f32[16,16], index: 0, kind: input, shape index: {}]   ;;  %s412_s1 = inlined_call_operand.vmem [shape: f32[2,16,8], index: 1, kind: input, shape index: {}]   ;;  %s413_s2 = inlined_call_operand.vmem [shape: f32[2,16,8], index: 2, kind: output, shape index: {}]  }
   0x1   :  { %s379_s11 = smov 0  }
   0x2 LB: > { %s24_s12 = sadd.s32 1, %s354_s10  ;;  %p299_p0 = scmp.ge.s32.totalorder %s358_s11, 1  ;;  %s358_s11 = sphi %s379_s11, %s12_s11   ;;  %s354_s10 = sphi %s377_s10, %s415_s10   ;;  %s350_s9 = sphi %s375_s9, %s414_s9  }
   0x3   : > { %p26_p1 = scmp.ge.s32.totalorder %s24_s12, 2  ;;  %p131_p2 = scmp.lt.s32.totalorder %s358_s11, 3 }
   0x5   : > { %s417_s12 = smov (%p26_p1, %s24_s12), 0  ;;  %p132_p3 = pnand %p299_p0, %p131_p2 }
   0x6   : > { %p159_p4 = scmp.lt.s32.totalorder (!%p132_p3), %s350_s9, 1 }
   0x7   : > { %135 = sbr.rel (%p132_p3) target bundleno = 147 (0x93), region = 28 }
   0xc   : > { %s419_s9 = smov (!%p159_p4, %s350_s9), 1  ;;  %v175_v2 = vld [vmem:[%s411_s0] sm:$0xff]  ;;  %vm179_vm0 = vcmask 130048   ;;  %v176_v3 = vld [vmem:[%s411_s0 + $0x8] sm:$0xff]  ;;  %vm209_vm1 = vcmask 64512  }
   0xd   : > { %s308_s13 = sshll.u32 %s419_s9, 4 }
   0xe   : > { %s166_s16 = scalar_lea.vmem %s412_s1, %s308_s13  ;;  %s174_s23 = scalar_lea.vmem %s413_s2, %s308_s13 }
   0xf   : > { %v178_v0 = vld [vmem:[%s166_s16 + $0x8] sm:$0xff]  ;;  %v177_v1 = vld [vmem:[%s166_s16] sm:$0xff] }
  0x10   : > { %200 = vmatpush.msra.mxu0 %v178_v0  ;;  %310 = vmatpush.msra.mxu1 %v178_v0 }
  0x12   : > { %201 = vmatpush.msra.mxu0 %v177_v1  ;;  %311 = vmatpush.msra.mxu1 %v177_v1 }
  0x13   : > { %304 = vmatmul.msk.f32.vlgmr.msra.gmra.mxu0 %vm179_vm0, %v175_v2  ;;  %305 = vmatmul.msk.f32.vlgmr.msra.gmra.mxu1 %vm179_vm0, %v176_v3 }
  0x90   : > { %v203_v4 = vpop.f32.mrf.mxu0  ;;  %v206_v5 = vpop.f32.mrf.mxu1 }
  0x91   : > { %210 = vst.msk [vmem:[%s174_s23] sm:$0xff] %vm209_vm1, %v203_v4 }
  0x92   : > { %211 = vst.msk [vmem:[%s174_s23 + $0x8] sm:$0xff] %vm209_vm1, %v206_v5 }
  0x93 PF: > { %s12_s11 = sadd.s32 1, %s358_s11   ;;  %s414_s9 = smov %s354_s10 }
  0x94   : > { %p9_p5 = scmp.ge.s32.totalorder %s12_s11, 4   ;;  %s415_s10 = smov %s417_s12 }
  0x96   :  { %11 = sbr.rel (!%p9_p5) target bundleno = 2 (0x2), region = 58 }

</bundles_post_ra>
